<compile_context>
chip_gen: v7x
topology: tpu7x:2x2x1
jax: 0.10.0
libtpu: 0.0.40
codegen_flags: <defaults>
</compile_context>

<pallas_src>
import functools

import jax
import jax.numpy as jnp
from jax.experimental import pallas as pl
from jax.experimental.pallas import tpu as pltpu


def _sdpa_kernel(temperature, has_mask, return_attn, *refs):
    refs = list(refs)
    mask_ref = refs.pop(0) if has_mask else None
    (pq_ref, pk_ref, pv_ref,
     tq_ref, tk_ref, tv_ref,
     dq_ref, dk_ref, dv_ref) = refs[:9]
    outs = refs[9:]
    if return_attn:
        poi_o, time_o, dist_o, a1_o, a2_o, a3_o = outs
    else:
        poi_o, time_o, dist_o = outs

    inv_t = 1.0 / temperature

    def softmax_last(s):
        m = jnp.max(s, axis=-1, keepdims=True)
        e = jnp.exp(s - m)
        denom = jnp.sum(e, axis=-1, keepdims=True)
        # EUP approximate reciprocal instead of a VPU divide.
        return e * pl.reciprocal(denom, approx=True)

    def attn_weights(q_ref, k_ref, mask=None):
        q = q_ref[...]
        k = k_ref[...]
        lq, dh = q.shape[-2], q.shape[-1]
        # Contract last dims directly (no explicit k.T relayout); scale whichever
        # tensor has fewer elements (static Python branch).
        if dh <= lq:
            s = jnp.einsum('bqd,bkd->bqk', q * inv_t, k,
                           preferred_element_type=jnp.float32)
        else:
            s = jnp.einsum('bqd,bkd->bqk', q, k,
                           preferred_element_type=jnp.float32) * inv_t
        if mask is not None:
            s = jnp.where(mask == 0, -1000000000.0, s)
        return softmax_last(s)

    a1 = attn_weights(pq_ref, pk_ref, mask_ref[...] if has_mask else None)  # (TB, L,  L)
    a2 = attn_weights(tq_ref, tk_ref)                                       # (TB, Lt, Lt)
    a3 = attn_weights(dq_ref, dk_ref)                                       # (TB, Lt, Lt)

    pv = pv_ref[...]                                                        # (TB, L, Dv)
    lt = a2.shape[-1]                                                       # == L - 1

    poi_out = jnp.einsum('bqk,bkd->bqd', a1, pv, preferred_element_type=jnp.float32)
    poi_o[...] = poi_out.astype(poi_o.dtype)

    # poi_output[..., 1:, :] += (attn2 + attn3) @ poi_v[..., :-1, :]
    # (fused into one matmul; in-ref slice add instead of a sublane concat)
    extra = jnp.einsum('bqk,bkd->bqd', a2 + a3, pv[:, :lt, :],
                       preferred_element_type=jnp.float32)
    tail = poi_o[:, pl.ds(1, lt), :]
    poi_o[:, pl.ds(1, lt), :] = (tail.astype(jnp.float32) + extra).astype(poi_o.dtype)

    time_o[...] = jnp.einsum('bqk,bkd->bqd', a2, tv_ref[...],
                             preferred_element_type=jnp.float32).astype(time_o.dtype)
    dist_o[...] = jnp.einsum('bqk,bkd->bqd', a3, dv_ref[...],
                             preferred_element_type=jnp.float32).astype(dist_o.dtype)

    if return_attn:
        a1_o[...] = a1.astype(a1_o.dtype)
        a2_o[...] = a2.astype(a2_o.dtype)
        a3_o[...] = a3.astype(a3_o.dtype)


def _largest_divisor_leq(n, cap):
    cap = max(1, min(n, cap))
    for d in range(cap, 0, -1):
        if n % d == 0:
            return d
    return 1


def scaled_dot_product_attention(poi_q, poi_k, poi_v,
                                 time_q, time_k, time_v,
                                 distance_q, distance_k, distance_v,
                                 mask=None, *, temperature=1.0,
                                 return_attn=True, block_heads=None):
    B, H, L, Dk = poi_q.shape
    Dv = poi_v.shape[-1]
    Lt = time_q.shape[2]            # == L - 1
    BH = B * H
    dtype = poi_q.dtype
    has_mask = mask is not None

    # ---- normalize mask (avoid the H-fold f32 broadcast) ---------------------------------
    per_batch_mask = False
    mask_arr = None
    if has_mask:
        m = jnp.asarray(mask)
        if m.ndim == 2:
            m = m[None, None]
        elif m.ndim == 3:
            m = m[:, None]
        per_batch_mask = (m.shape[1] == 1)
        if per_batch_mask:
            m = jnp.broadcast_to(m, (B, 1, L, L)).reshape(B, L, L)
        else:
            m = jnp.broadcast_to(m, (B, H, L, L)).reshape(BH, L, L)
        mask_arr = (m != 0).astype(jnp.int32)

    # ---- choose heads-per-block TB against a conservative VMEM budget ---------------------
    itemsize = jnp.dtype(dtype).itemsize
    bytes_per_head = itemsize * (
        2 * L * Dk + L * Dv +            # poi q, k, v
        2 * (2 * Lt * Dk + Lt * Dv) +    # time & distance q, k, v
        L * Dv + 2 * Lt * Dv)            # value outputs
    if return_attn:
        bytes_per_head += itemsize * (L * L + 2 * Lt * Lt)
    if has_mask and not per_batch_mask:
        bytes_per_head += 4 * L * L
    budget = 4 * 1024 * 1024             # per pipeline buffer (x2 double buffering)
    cap = max(1, budget // max(1, bytes_per_head))
    if BH >= 2:
        cap = min(cap, BH // 2)          # keep >= 2 grid steps for v7x megacore
    div_base = H if (has_mask and per_batch_mask) else BH
    TB = block_heads if block_heads is not None else _largest_divisor_leq(div_base, cap)
    assert BH % TB == 0 and (not (has_mask and per_batch_mask) or H % TB == 0)
    grid = (BH // TB,)

    def flat(x):
        return x.reshape((BH,) + x.shape[2:])

    def spec(l, d):
        return pl.BlockSpec((TB, l, d), lambda i: (i, 0, 0))

    in_specs = []
    args = []
    if has_mask:
        if per_batch_mask:
            tb, h = TB, H
            in_specs.append(pl.BlockSpec((1, L, L), lambda i: ((i * tb) // h, 0, 0)))
        else:
            in_specs.append(pl.BlockSpec((TB, L, L), lambda i: (i, 0, 0)))
        args.append(mask_arr)

    in_specs += [spec(L, Dk), spec(L, Dk), spec(L, Dv),
                 spec(Lt, Dk), spec(Lt, Dk), spec(Lt, Dv),
                 spec(Lt, Dk), spec(Lt, Dk), spec(Lt, Dv)]
    args += [flat(poi_q), flat(poi_k), flat(poi_v),
             flat(time_q), flat(time_k), flat(time_v),
             flat(distance_q), flat(distance_k), flat(distance_v)]

    out_specs = [spec(L, Dv), spec(Lt, Dv), spec(Lt, Dv)]
    out_shape = [jax.ShapeDtypeStruct((BH, L, Dv), dtype),
                 jax.ShapeDtypeStruct((BH, Lt, Dv), dtype),
                 jax.ShapeDtypeStruct((BH, Lt, Dv), dtype)]
    if return_attn:
        out_specs += [spec(L, L), spec(Lt, Lt), spec(Lt, Lt)]
        out_shape += [jax.ShapeDtypeStruct((BH, L, L), dtype),
                      jax.ShapeDtypeStruct((BH, Lt, Lt), dtype),
                      jax.ShapeDtypeStruct((BH, Lt, Lt), dtype)]

    kernel = functools.partial(_sdpa_kernel, float(temperature), has_mask, return_attn)

    outs = pl.pallas_call(
        kernel,
        grid=grid,
        in_specs=in_specs,
        out_specs=out_specs,
        out_shape=out_shape,
        compiler_params=pltpu.CompilerParams(
            dimension_semantics=("parallel",),
            vmem_limit_bytes=32 * 1024 * 1024),
    )(*args)

    def unflat(x):
        return x.reshape((B, H) + x.shape[1:])

    return tuple(unflat(o) for o in outs)


def _reference(poi_q, poi_k, poi_v, time_q, time_k, time_v,
               distance_q, distance_k, distance_v, mask=None, *, temperature=1.0):
    def attn(q, k, m=None):
        s = jnp.einsum('bhqd,bhkd->bhqk', q / temperature, k)
        if m is not None:
            s = jnp.where(m == 0, -1000000000.0, s)
        return jax.nn.softmax(s, axis=-1)

    a1 = attn(poi_q, poi_k, mask)
    a2 = attn(time_q, time_k)
    a3 = attn(distance_q, distance_k)
    poi_out = jnp.einsum('bhqk,bhkd->bhqd', a1, poi_v)
    time_out = jnp.einsum('bhqk,bhkd->bhqd', a2, time_v)
    dist_out = jnp.einsum('bhqk,bhkd->bhqd', a3, distance_v)
    extra = (jnp.einsum('bhqk,bhkd->bhqd', a2, poi_v[..., :-1, :]) +
             jnp.einsum('bhqk,bhkd->bhqd', a3, poi_v[..., :-1, :]))
    poi_out = poi_out.at[..., 1:, :].add(extra)
    return poi_out, time_out, dist_out, a1, a2, a3


if __name__ == "__main__":
    B, H, L, Dk, Dv = 2, 2, 8, 16, 16
    Lt = L - 1                      # time / distance streams have one fewer step
    temperature = float(Dk) ** 0.5  # module hyper-parameter
    # attn_dropout = 0.1            # unused: dropout is identity at inference

    key = jax.random.PRNGKey(0)
    ks = jax.random.split(key, 9)
    poi_q = jax.random.normal(ks[0], (B, H, L, Dk), jnp.float32)
    poi_k = jax.random.normal(ks[1], (B, H, L, Dk), jnp.float32)
    poi_v = jax.random.normal(ks[2], (B, H, L, Dv), jnp.float32)
    time_q = jax.random.normal(ks[3], (B, H, Lt, Dk), jnp.float32)
    time_k = jax.random.normal(ks[4], (B, H, Lt, Dk), jnp.float32)
    time_v = jax.random.normal(ks[5], (B, H, Lt, Dv), jnp.float32)
    dist_q = jax.random.normal(ks[6], (B, H, Lt, Dk), jnp.float32)
    dist_k = jax.random.normal(ks[7], (B, H, Lt, Dk), jnp.float32)
    dist_v = jax.random.normal(ks[8], (B, H, Lt, Dv), jnp.float32)

    # tolerance accounts for the EUP approx reciprocal in the softmax denominator
    ATOL = RTOL = 5e-3

    # -- no-mask path (static no-mask kernel variant) ------------------------------------
    outs = scaled_dot_product_attention(
        poi_q, poi_k, poi_v, time_q, time_k, time_v,
        dist_q, dist_k, dist_v, mask=None, temperature=temperature)
    outs = jax.block_until_ready(outs)
    refs = _reference(
        poi_q, poi_k, poi_v, time_q, time_k, time_v,
        dist_q, dist_k, dist_v, mask=None, temperature=temperature)
    for o, r in zip(outs, refs):
        assert o.shape == r.shape, (o.shape, r.shape)
        assert jnp.allclose(o, r, atol=ATOL, rtol=RTOL), float(jnp.max(jnp.abs(o - r)))

    # -- masked path: (B, 1, L, L) causal mask streamed once per batch element -----------
    mask = jnp.broadcast_to(jnp.tril(jnp.ones((L, L), jnp.float32)), (B, 1, L, L))
    outs_m = scaled_dot_product_attention(
        poi_q, poi_k, poi_v, time_q, time_k, time_v,
        dist_q, dist_k, dist_v, mask=mask, temperature=temperature)
    outs_m = jax.block_until_ready(outs_m)
    refs_m = _reference(
        poi_q, poi_k, poi_v, time_q, time_k, time_v,
        dist_q, dist_k, dist_v, mask=mask, temperature=temperature)
    for o, r in zip(outs_m, refs_m):
        assert o.shape == r.shape, (o.shape, r.shape)
        assert jnp.allclose(o, r, atol=ATOL, rtol=RTOL), float(jnp.max(jnp.abs(o - r)))

    print("KERNEL_OK")
</pallas_src>

<mosaic_0001>
module attributes {stable_mosaic.version = 11 : i64} {
  func.func @_sdpa_kernel(%arg0: i32, %arg1: memref<2x8x16xf32, #tpu.memory_space<vmem>>, %arg2: memref<2x8x16xf32, #tpu.memory_space<vmem>>, %arg3: memref<2x8x16xf32, #tpu.memory_space<vmem>>, %arg4: memref<2x7x16xf32, #tpu.memory_space<vmem>>, %arg5: memref<2x7x16xf32, #tpu.memory_space<vmem>>, %arg6: memref<2x7x16xf32, #tpu.memory_space<vmem>>, %arg7: memref<2x7x16xf32, #tpu.memory_space<vmem>>, %arg8: memref<2x7x16xf32, #tpu.memory_space<vmem>>, %arg9: memref<2x7x16xf32, #tpu.memory_space<vmem>>, %arg10: memref<2x8x16xf32, #tpu.memory_space<vmem>>, %arg11: memref<2x7x16xf32, #tpu.memory_space<vmem>>, %arg12: memref<2x7x16xf32, #tpu.memory_space<vmem>>, %arg13: memref<2x8x8xf32, #tpu.memory_space<vmem>>, %arg14: memref<2x7x7xf32, #tpu.memory_space<vmem>>, %arg15: memref<2x7x7xf32, #tpu.memory_space<vmem>>) attributes {dimension_semantics = [#tpu.dimension_semantics<parallel>], iteration_bounds = array<i64: 2>, scalar_prefetch = 0 : i64, scratch_operands = 0 : i64, tpu.core_type = #tpu.core_type<tc>, window_params = [{transform_indices = @transform_0, window_bounds = array<i64: 2, 8, 16>}, {transform_indices = @transform_1, window_bounds = array<i64: 2, 8, 16>}, {transform_indices = @transform_2, window_bounds = array<i64: 2, 8, 16>}, {transform_indices = @transform_3, window_bounds = array<i64: 2, 7, 16>}, {transform_indices = @transform_4, window_bounds = array<i64: 2, 7, 16>}, {transform_indices = @transform_5, window_bounds = array<i64: 2, 7, 16>}, {transform_indices = @transform_6, window_bounds = array<i64: 2, 7, 16>}, {transform_indices = @transform_7, window_bounds = array<i64: 2, 7, 16>}, {transform_indices = @transform_8, window_bounds = array<i64: 2, 7, 16>}, {transform_indices = @transform_9, window_bounds = array<i64: 2, 8, 16>}, {transform_indices = @transform_10, window_bounds = array<i64: 2, 7, 16>}, {transform_indices = @transform_11, window_bounds = array<i64: 2, 7, 16>}, {transform_indices = @transform_12, window_bounds = array<i64: 2, 8, 8>}, {transform_indices = @transform_13, window_bounds = array<i64: 2, 7, 7>}, {transform_indices = @transform_14, window_bounds = array<i64: 2, 7, 7>}]} {
    %c0 = arith.constant 0 : index
    %c0_0 = arith.constant 0 : index
    %c0_1 = arith.constant 0 : index
    %0 = vector.load %arg1[%c0, %c0_0, %c0_1] : memref<2x8x16xf32, #tpu.memory_space<vmem>>, vector<2x8x16xf32>
    %c0_2 = arith.constant 0 : index
    %c0_3 = arith.constant 0 : index
    %c0_4 = arith.constant 0 : index
    %1 = vector.load %arg2[%c0_2, %c0_3, %c0_4] : memref<2x8x16xf32, #tpu.memory_space<vmem>>, vector<2x8x16xf32>
    "tpu.trace_start"() <{level = 10 : i32, message = "bqd,bkd->bqk"}> : () -> ()
    %cst = arith.constant dense<0.000000e+00> : vector<2x8x8xf32>
    %2 = tpu.matmul %0, %1, %cst {dimension_numbers = #tpu.dot_dimension_numbers<[2], [2], [1], [1], [0, 0, 0, 1, 1, 1], [0], [0]>} : vector<2x8x16xf32>, vector<2x8x16xf32>, vector<2x8x8xf32> -> vector<2x8x8xf32>
    "tpu.trace_stop"() : () -> ()
    %cst_5 = arith.constant 2.500000e-01 : f32
    %3 = vector.broadcast %cst_5 : f32 to vector<2x8x8xf32>
    %4 = arith.mulf %2, %3 : vector<2x8x8xf32>
    %cst_6 = arith.constant dense<0xFF800000> : vector<2x8xf32>
    %5 = vector.multi_reduction <maximumf>, %4, %cst_6 [2] : vector<2x8x8xf32> to vector<2x8xf32>
    %6 = vector.shape_cast %5 : vector<2x8xf32> to vector<2x8x1xf32>
    %7 = vector.broadcast %6 : vector<2x8x1xf32> to vector<2x8x8xf32>
    %8 = arith.subf %4, %7 : vector<2x8x8xf32>
    %9 = math.exp %8 : vector<2x8x8xf32>
    %cst_7 = arith.constant dense<0.000000e+00> : vector<2x8xf32>
    %10 = vector.multi_reduction <add>, %9, %cst_7 [2] : vector<2x8x8xf32> to vector<2x8xf32>
    %11 = vector.shape_cast %10 : vector<2x8xf32> to vector<2x8x1xf32>
    %12 = tpu.reciprocal %11 {approx = true} : vector<2x8x1xf32> -> vector<2x8x1xf32>
    %13 = vector.broadcast %12 : vector<2x8x1xf32> to vector<2x8x8xf32>
    %14 = arith.mulf %9, %13 : vector<2x8x8xf32>
    %c0_8 = arith.constant 0 : index
    %c0_9 = arith.constant 0 : index
    %c0_10 = arith.constant 0 : index
    %15 = vector.load %arg4[%c0_8, %c0_9, %c0_10] : memref<2x7x16xf32, #tpu.memory_space<vmem>>, vector<2x7x16xf32>
    %c0_11 = arith.constant 0 : index
    %c0_12 = arith.constant 0 : index
    %c0_13 = arith.constant 0 : index
    %16 = vector.load %arg5[%c0_11, %c0_12, %c0_13] : memref<2x7x16xf32, #tpu.memory_space<vmem>>, vector<2x7x16xf32>
    "tpu.trace_start"() <{level = 10 : i32, message = "bqd,bkd->bqk"}> : () -> ()
    %cst_14 = arith.constant dense<0.000000e+00> : vector<2x7x7xf32>
    %17 = tpu.matmul %15, %16, %cst_14 {dimension_numbers = #tpu.dot_dimension_numbers<[2], [2], [1], [1], [0, 0, 0, 1, 1, 1], [0], [0]>} : vector<2x7x16xf32>, vector<2x7x16xf32>, vector<2x7x7xf32> -> vector<2x7x7xf32>
    "tpu.trace_stop"() : () -> ()
    %cst_15 = arith.constant 2.500000e-01 : f32
    %18 = vector.broadcast %cst_15 : f32 to vector<2x7x7xf32>
    %19 = arith.mulf %17, %18 : vector<2x7x7xf32>
    %cst_16 = arith.constant dense<0xFF800000> : vector<2x7xf32>
    %20 = vector.multi_reduction <maximumf>, %19, %cst_16 [2] : vector<2x7x7xf32> to vector<2x7xf32>
    %21 = vector.shape_cast %20 : vector<2x7xf32> to vector<2x7x1xf32>
    %22 = vector.broadcast %21 : vector<2x7x1xf32> to vector<2x7x7xf32>
    %23 = arith.subf %19, %22 : vector<2x7x7xf32>
    %24 = math.exp %23 : vector<2x7x7xf32>
    %cst_17 = arith.constant dense<0.000000e+00> : vector<2x7xf32>
    %25 = vector.multi_reduction <add>, %24, %cst_17 [2] : vector<2x7x7xf32> to vector<2x7xf32>
    %26 = vector.shape_cast %25 : vector<2x7xf32> to vector<2x7x1xf32>
    %27 = tpu.reciprocal %26 {approx = true} : vector<2x7x1xf32> -> vector<2x7x1xf32>
    %28 = vector.broadcast %27 : vector<2x7x1xf32> to vector<2x7x7xf32>
    %29 = arith.mulf %24, %28 : vector<2x7x7xf32>
    %c0_18 = arith.constant 0 : index
    %c0_19 = arith.constant 0 : index
    %c0_20 = arith.constant 0 : index
    %30 = vector.load %arg7[%c0_18, %c0_19, %c0_20] : memref<2x7x16xf32, #tpu.memory_space<vmem>>, vector<2x7x16xf32>
    %c0_21 = arith.constant 0 : index
    %c0_22 = arith.constant 0 : index
    %c0_23 = arith.constant 0 : index
    %31 = vector.load %arg8[%c0_21, %c0_22, %c0_23] : memref<2x7x16xf32, #tpu.memory_space<vmem>>, vector<2x7x16xf32>
    "tpu.trace_start"() <{level = 10 : i32, message = "bqd,bkd->bqk"}> : () -> ()
    %cst_24 = arith.constant dense<0.000000e+00> : vector<2x7x7xf32>
    %32 = tpu.matmul %30, %31, %cst_24 {dimension_numbers = #tpu.dot_dimension_numbers<[2], [2], [1], [1], [0, 0, 0, 1, 1, 1], [0], [0]>} : vector<2x7x16xf32>, vector<2x7x16xf32>, vector<2x7x7xf32> -> vector<2x7x7xf32>
    "tpu.trace_stop"() : () -> ()
    %cst_25 = arith.constant 2.500000e-01 : f32
    %33 = vector.broadcast %cst_25 : f32 to vector<2x7x7xf32>
    %34 = arith.mulf %32, %33 : vector<2x7x7xf32>
    %cst_26 = arith.constant dense<0xFF800000> : vector<2x7xf32>
    %35 = vector.multi_reduction <maximumf>, %34, %cst_26 [2] : vector<2x7x7xf32> to vector<2x7xf32>
    %36 = vector.shape_cast %35 : vector<2x7xf32> to vector<2x7x1xf32>
    %37 = vector.broadcast %36 : vector<2x7x1xf32> to vector<2x7x7xf32>
    %38 = arith.subf %34, %37 : vector<2x7x7xf32>
    %39 = math.exp %38 : vector<2x7x7xf32>
    %cst_27 = arith.constant dense<0.000000e+00> : vector<2x7xf32>
    %40 = vector.multi_reduction <add>, %39, %cst_27 [2] : vector<2x7x7xf32> to vector<2x7xf32>
    %41 = vector.shape_cast %40 : vector<2x7xf32> to vector<2x7x1xf32>
    %42 = tpu.reciprocal %41 {approx = true} : vector<2x7x1xf32> -> vector<2x7x1xf32>
    %43 = vector.broadcast %42 : vector<2x7x1xf32> to vector<2x7x7xf32>
    %44 = arith.mulf %39, %43 : vector<2x7x7xf32>
    %c0_28 = arith.constant 0 : index
    %c0_29 = arith.constant 0 : index
    %c0_30 = arith.constant 0 : index
    %45 = vector.load %arg3[%c0_28, %c0_29, %c0_30] : memref<2x8x16xf32, #tpu.memory_space<vmem>>, vector<2x8x16xf32>
    "tpu.trace_start"() <{level = 10 : i32, message = "bqk,bkd->bqd"}> : () -> ()
    %cst_31 = arith.constant dense<0.000000e+00> : vector<2x8x16xf32>
    %46 = tpu.matmul %14, %45, %cst_31 {dimension_numbers = #tpu.dot_dimension_numbers<[2], [1], [1], [2], [0, 0, 0, 1, 1, 2], [0], [0]>} : vector<2x8x8xf32>, vector<2x8x16xf32>, vector<2x8x16xf32> -> vector<2x8x16xf32>
    "tpu.trace_stop"() : () -> ()
    %c0_32 = arith.constant 0 : index
    %c0_33 = arith.constant 0 : index
    %c0_34 = arith.constant 0 : index
    %47 = vector.load %arg10[%c0_32, %c0_33, %c0_34] : memref<2x8x16xf32, #tpu.memory_space<vmem>>, vector<2x8x16xf32>
    tpu.vector_store %arg10[%c0_32, %c0_33, %c0_34], %46 {strides = array<i32>} : memref<2x8x16xf32, #tpu.memory_space<vmem>>, vector<2x8x16xf32>,
    %48 = arith.addf %29, %44 : vector<2x7x7xf32>
    %49 = vector.extract_strided_slice %45 {offsets = [0, 0, 0], sizes = [2, 7, 16], strides = [1, 1, 1]} : vector<2x8x16xf32> to vector<2x7x16xf32>
    "tpu.trace_start"() <{level = 10 : i32, message = "bqk,bkd->bqd"}> : () -> ()
    %cst_35 = arith.constant dense<0.000000e+00> : vector<2x7x16xf32>
    %50 = tpu.matmul %48, %49, %cst_35 {dimension_numbers = #tpu.dot_dimension_numbers<[2], [1], [1], [2], [0, 0, 0, 1, 1, 2], [0], [0]>} : vector<2x7x7xf32>, vector<2x7x16xf32>, vector<2x7x16xf32> -> vector<2x7x16xf32>
    "tpu.trace_stop"() : () -> ()
    %c0_36 = arith.constant 0 : index
    %c1 = arith.constant 1 : index
    %c0_37 = arith.constant 0 : index
    %51 = vector.load %arg10[%c0_36, %c1, %c0_37] : memref<2x8x16xf32, #tpu.memory_space<vmem>>, vector<2x7x16xf32>
    %52 = arith.addf %51, %50 : vector<2x7x16xf32>
    %c0_38 = arith.constant 0 : index
    %c1_39 = arith.constant 1 : index
    %c0_40 = arith.constant 0 : index
    %53 = vector.load %arg10[%c0_38, %c1_39, %c0_40] : memref<2x8x16xf32, #tpu.memory_space<vmem>>, vector<2x7x16xf32>
    tpu.vector_store %arg10[%c0_38, %c1_39, %c0_40], %52 {strides = array<i32>} : memref<2x8x16xf32, #tpu.memory_space<vmem>>, vector<2x7x16xf32>,
    %c0_41 = arith.constant 0 : index
    %c0_42 = arith.constant 0 : index
    %c0_43 = arith.constant 0 : index
    %54 = vector.load %arg6[%c0_41, %c0_42, %c0_43] : memref<2x7x16xf32, #tpu.memory_space<vmem>>, vector<2x7x16xf32>
    "tpu.trace_start"() <{level = 10 : i32, message = "bqk,bkd->bqd"}> : () -> ()
    %cst_44 = arith.constant dense<0.000000e+00> : vector<2x7x16xf32>
    %55 = tpu.matmul %29, %54, %cst_44 {dimension_numbers = #tpu.dot_dimension_numbers<[2], [1], [1], [2], [0, 0, 0, 1, 1, 2], [0], [0]>} : vector<2x7x7xf32>, vector<2x7x16xf32>, vector<2x7x16xf32> -> vector<2x7x16xf32>
    "tpu.trace_stop"() : () -> ()
    %c0_45 = arith.constant 0 : index
    %c0_46 = arith.constant 0 : index
    %c0_47 = arith.constant 0 : index
    %56 = vector.load %arg11[%c0_45, %c0_46, %c0_47] : memref<2x7x16xf32, #tpu.memory_space<vmem>>, vector<2x7x16xf32>
    tpu.vector_store %arg11[%c0_45, %c0_46, %c0_47], %55 {strides = array<i32>} : memref<2x7x16xf32, #tpu.memory_space<vmem>>, vector<2x7x16xf32>,
    %c0_48 = arith.constant 0 : index
    %c0_49 = arith.constant 0 : index
    %c0_50 = arith.constant 0 : index
    %57 = vector.load %arg9[%c0_48, %c0_49, %c0_50] : memref<2x7x16xf32, #tpu.memory_space<vmem>>, vector<2x7x16xf32>
    "tpu.trace_start"() <{level = 10 : i32, message = "bqk,bkd->bqd"}> : () -> ()
    %cst_51 = arith.constant dense<0.000000e+00> : vector<2x7x16xf32>
    %58 = tpu.matmul %44, %57, %cst_51 {dimension_numbers = #tpu.dot_dimension_numbers<[2], [1], [1], [2], [0, 0, 0, 1, 1, 2], [0], [0]>} : vector<2x7x7xf32>, vector<2x7x16xf32>, vector<2x7x16xf32> -> vector<2x7x16xf32>
    "tpu.trace_stop"() : () -> ()
    %c0_52 = arith.constant 0 : index
    %c0_53 = arith.constant 0 : index
    %c0_54 = arith.constant 0 : index
    %59 = vector.load %arg12[%c0_52, %c0_53, %c0_54] : memref<2x7x16xf32, #tpu.memory_space<vmem>>, vector<2x7x16xf32>
    tpu.vector_store %arg12[%c0_52, %c0_53, %c0_54], %58 {strides = array<i32>} : memref<2x7x16xf32, #tpu.memory_space<vmem>>, vector<2x7x16xf32>,
    %c0_55 = arith.constant 0 : index
    %c0_56 = arith.constant 0 : index
    %c0_57 = arith.constant 0 : index
    %60 = vector.load %arg13[%c0_55, %c0_56, %c0_57] : memref<2x8x8xf32, #tpu.memory_space<vmem>>, vector<2x8x8xf32>
    tpu.vector_store %arg13[%c0_55, %c0_56, %c0_57], %14 {strides = array<i32>} : memref<2x8x8xf32, #tpu.memory_space<vmem>>, vector<2x8x8xf32>,
    %c0_58 = arith.constant 0 : index
    %c0_59 = arith.constant 0 : index
    %c0_60 = arith.constant 0 : index
    %61 = vector.load %arg14[%c0_58, %c0_59, %c0_60] : memref<2x7x7xf32, #tpu.memory_space<vmem>>, vector<2x7x7xf32>
    tpu.vector_store %arg14[%c0_58, %c0_59, %c0_60], %29 {strides = array<i32>} : memref<2x7x7xf32, #tpu.memory_space<vmem>>, vector<2x7x7xf32>,
    %c0_61 = arith.constant 0 : index
    %c0_62 = arith.constant 0 : index
    %c0_63 = arith.constant 0 : index
    %62 = vector.load %arg15[%c0_61, %c0_62, %c0_63] : memref<2x7x7xf32, #tpu.memory_space<vmem>>, vector<2x7x7xf32>
    tpu.vector_store %arg15[%c0_61, %c0_62, %c0_63], %44 {strides = array<i32>} : memref<2x7x7xf32, #tpu.memory_space<vmem>>, vector<2x7x7xf32>,
    return
  }
  func.func @transform_0(%arg0: i32) -> (i32, i32, i32) {
    %c0_i32 = arith.constant 0 : i32
    %c0_i32_0 = arith.constant 0 : i32
    %c0_i32_1 = arith.constant 0 : i32
    return %arg0, %c0_i32, %c0_i32_0 : i32, i32, i32
  }
  func.func @transform_1(%arg0: i32) -> (i32, i32, i32) {
    %c0_i32 = arith.constant 0 : i32
    %c0_i32_0 = arith.constant 0 : i32
    %c0_i32_1 = arith.constant 0 : i32
    return %arg0, %c0_i32, %c0_i32_0 : i32, i32, i32
  }
  func.func @transform_2(%arg0: i32) -> (i32, i32, i32) {
    %c0_i32 = arith.constant 0 : i32
    %c0_i32_0 = arith.constant 0 : i32
    %c0_i32_1 = arith.constant 0 : i32
    return %arg0, %c0_i32, %c0_i32_0 : i32, i32, i32
  }
  func.func @transform_3(%arg0: i32) -> (i32, i32, i32) {
    %c0_i32 = arith.constant 0 : i32
    %c0_i32_0 = arith.constant 0 : i32
    %c0_i32_1 = arith.constant 0 : i32
    return %arg0, %c0_i32, %c0_i32_0 : i32, i32, i32
  }
  func.func @transform_4(%arg0: i32) -> (i32, i32, i32) {
    %c0_i32 = arith.constant 0 : i32
    %c0_i32_0 = arith.constant 0 : i32
    %c0_i32_1 = arith.constant 0 : i32
    return %arg0, %c0_i32, %c0_i32_0 : i32, i32, i32
  }
  func.func @transform_5(%arg0: i32) -> (i32, i32, i32) {
    %c0_i32 = arith.constant 0 : i32
    %c0_i32_0 = arith.constant 0 : i32
    %c0_i32_1 = arith.constant 0 : i32
    return %arg0, %c0_i32, %c0_i32_0 : i32, i32, i32
  }
  func.func @transform_6(%arg0: i32) -> (i32, i32, i32) {
    %c0_i32 = arith.constant 0 : i32
    %c0_i32_0 = arith.constant 0 : i32
    %c0_i32_1 = arith.constant 0 : i32
    return %arg0, %c0_i32, %c0_i32_0 : i32, i32, i32
  }
  func.func @transform_7(%arg0: i32) -> (i32, i32, i32) {
    %c0_i32 = arith.constant 0 : i32
    %c0_i32_0 = arith.constant 0 : i32
    %c0_i32_1 = arith.constant 0 : i32
    return %arg0, %c0_i32, %c0_i32_0 : i32, i32, i32
  }
  func.func @transform_8(%arg0: i32) -> (i32, i32, i32) {
    %c0_i32 = arith.constant 0 : i32
    %c0_i32_0 = arith.constant 0 : i32
    %c0_i32_1 = arith.constant 0 : i32
    return %arg0, %c0_i32, %c0_i32_0 : i32, i32, i32
  }
  func.func @transform_9(%arg0: i32) -> (i32, i32, i32) {
    %c0_i32 = arith.constant 0 : i32
    %c0_i32_0 = arith.constant 0 : i32
    %c0_i32_1 = arith.constant 0 : i32
    return %arg0, %c0_i32, %c0_i32_0 : i32, i32, i32
  }
  func.func @transform_10(%arg0: i32) -> (i32, i32, i32) {
    %c0_i32 = arith.constant 0 : i32
    %c0_i32_0 = arith.constant 0 : i32
    %c0_i32_1 = arith.constant 0 : i32
    return %arg0, %c0_i32, %c0_i32_0 : i32, i32, i32
  }
  func.func @transform_11(%arg0: i32) -> (i32, i32, i32) {
    %c0_i32 = arith.constant 0 : i32
    %c0_i32_0 = arith.constant 0 : i32
    %c0_i32_1 = arith.constant 0 : i32
    return %arg0, %c0_i32, %c0_i32_0 : i32, i32, i32
  }
  func.func @transform_12(%arg0: i32) -> (i32, i32, i32) {
    %c0_i32 = arith.constant 0 : i32
    %c0_i32_0 = arith.constant 0 : i32
    %c0_i32_1 = arith.constant 0 : i32
    return %arg0, %c0_i32, %c0_i32_0 : i32, i32, i32
  }
  func.func @transform_13(%arg0: i32) -> (i32, i32, i32) {
    %c0_i32 = arith.constant 0 : i32
    %c0_i32_0 = arith.constant 0 : i32
    %c0_i32_1 = arith.constant 0 : i32
    return %arg0, %c0_i32, %c0_i32_0 : i32, i32, i32
  }
  func.func @transform_14(%arg0: i32) -> (i32, i32, i32) {
    %c0_i32 = arith.constant 0 : i32
    %c0_i32_0 = arith.constant 0 : i32
    %c0_i32_1 = arith.constant 0 : i32
    return %arg0, %c0_i32, %c0_i32_0 : i32, i32, i32
  }
}

</mosaic_0001>

<bundles_post_ra>
// kernel: tpu_custom_call.1
= control target key start
LH: loop header
LB: loop body
LE: loop exit
PB: predicated region body
PF: predicated region fallthrough
CT: control target
= control target key end

     0   :  { %s2967_s0 = inlined_call_operand.vmem [shape: f32[4,8,16], index: 0, kind: input, shape index: {}]   ;;  %s2968_s1 = inlined_call_operand.vmem [shape: f32[4,8,16], index: 1, kind: input, shape index: {}]   ;;  %s2969_s2 = inlined_call_operand.vmem [shape: f32[4,8,16], index: 2, kind: input, shape index: {}]   ;;  %s2970_s3 = inlined_call_operand.vmem [shape: f32[4,7,16], index: 3, kind: input, shape index: {}]   ;;  %s2971_s4 = inlined_call_operand.vmem [shape: f32[4,7,16], index: 4, kind: input, shape index: {}]   ;;  %s2972_s5 = inlined_call_operand.vmem [shape: f32[4,7,16], index: 5, kind: input, shape index: {}]   ;;  %s2973_s6 = inlined_call_operand.vmem [shape: f32[4,7,16], index: 6, kind: input, shape index: {}]   ;;  %s2974_s7 = inlined_call_operand.vmem [shape: f32[4,7,16], index: 7, kind: input, shape index: {}]   ;;  %s2975_s8 = inlined_call_operand.vmem [shape: f32[4,7,16], index: 8, kind: input, shape index: {}]   ;;  %s2976_s9 = inlined_call_operand.hbm [shape: f32[4,8,16], index: 9, kind: output, shape index: {0}]   ;;  %s2977_s10 = inlined_call_operand.vmem [shape: f32[4,7,16], index: 10, kind: output, shape index: {1}]   ;;  %s2978_s11 = inlined_call_operand.vmem [shape: f32[4,7,16], index: 11, kind: output, shape index: {2}]   ;;  %s2979_s12 = inlined_call_operand.hbm [shape: f32[4,8,8], index: 12, kind: output, shape index: {3}]   ;;  %s2980_s13 = inlined_call_operand.vmem [shape: f32[4,7,7], index: 13, kind: output, shape index: {4}]   ;;  %s2981_s14 = inlined_call_operand.vmem [shape: f32[4,7,7], index: 14, kind: output, shape index: {5}]  }
   0x1   :  { %2989 = sst [smem:[#allocation11_spill]] %s2967_s0 }
   0x2   :  { %2990 = sst [smem:[#allocation12_spill]] %s2968_s1 }
   0x3   :  { %2991 = sst [smem:[#allocation13_spill]] %s2969_s2 }
   0x4   :  { %20 = vsyncpa [#allocation3], 0 }
   0x5   :  { %22 = vsyncpa [#allocation3 + $0x1], 0 }
   0x6   :  { %23 = vsyncpa [#allocation5], 0 }
   0x7   :  { %25 = vsyncpa [#allocation5 + $0x1], 0  ;;  %s2659_s29 = smov 0   ;;  %s2661_s30 = smov 0  }
   0x8   :  { %s2663_s15 = smov 0   ;;  %s2665_s16 = smov 0  }
   0x9 LB: > { %2992 = sst [smem:[#allocation8_spill]] %s2572_s15  ;;  %s2680_s17 = sadd.s32 4294967295, %s2576_s16   ;;  %s2576_s16 = sphi %s2665_s16, %s3004_s16   ;;  %s2572_s15 = sphi %s2663_s15, %s3006_s15   ;;  %s2568_s30 = sphi %s2661_s30, %s3008_s30   ;;  %s2564_s29 = sphi %s2659_s29, %s3007_s29  }
   0xa   : > { %s2244_s18 = sadd.s32 4294967294, %s2576_s16   ;;  %s2684_s19 = sadd.s32 1, %s2576_s16  }
   0xb   : > { %2993 = sst [smem:[#allocation9_spill]] %s2684_s19  ;;  %s272_s20 = sadd.s32 1, %s2572_s15 }
   0xc   : > { %s269_s21 = ssub.s32 %s2576_s16, %s2684_s19  ;;  %p282_p0 = scmp.ne.s32.totalorder %s2572_s15, %s2568_s30 }
   0xd   : > { %p270_p1 = scmp.eq.s32.totalorder %s269_s21, 0  ;;  %p283_p2 = scmp.eq.s32.totalorder %s2680_s17, 1 }
   0xe   : > { %p288_p3 = scmp.ne.s32.totalorder %s2568_s30, %s2564_s29  ;;  %p289_p4 = scmp.eq.s32.totalorder %s2244_s18, 1 }
   0xf   : > { %s2695_s22 = scalar_select %p270_p1, %s2572_s15, %s272_s20  }
  0x10   : > { %p2697_p5 = por %p283_p2, %p282_p0  ;;  %p2701_p6 = por %p289_p4, %p288_p3 }
  0x11   : > { %2994 = sst [smem:[#allocation10_spill]] %s2695_s22  ;;  %p2247_p7 = scmp.ge.s32.totalorder %s2576_s16, 1 }
  0x12   : > { %p518_p8 = scmp.lt.s32.totalorder %s2576_s16, 3 }
  0x14   : > { %p519_p9 = pnand %p2247_p7, %p518_p8 }
  0x15   : > { %s2250_s25 = sshll.u32 (!%p519_p9), %s2680_s17, 1  ;;  %v2578_v0 = vmov (!%p519_p9), 0.0   ;;  %vm2579_vm0 = vmmov (!%p519_p9), 0   ;;  %vm713_vm1 = vcmask (!%p519_p9), 130048   ;;  %s2997_s1 = sld [smem:[#allocation12_spill]] (!%p519_p9)  ;;  %vm868_vm2 = vcmask (!%p519_p9), 64512  }
  0x16   : > { %522 = sbr.rel (%p519_p9) target bundleno = 810 (0x32a), region = 56  ;;  %2340 = vmatprep.subr.mxu0 (!%p519_p9), %v2578_v0  ;;  %p630_p10 = scmp.lt.s32.totalorder (!%p519_p9), %s2250_s25, 3  ;;  %2342 = vmatprep.mubr.msk.f32.mxu0 (!%p519_p9), %vm2579_vm0, %v2578_v0  ;;  %vm1049_vm3 = vcmask (!%p519_p9), 55296   ;;  %vm1408_vm4 = vcmask (!%p519_p9), 1046528   ;;  %vm1404_vm5 = vcmask (!%p519_p9), 56320  }
  0x17   : > { %2345 = vmatprep.subr.mxu1 (!%p519_p9), %v2578_v0  ;;  %2347 = vmatprep.mubr.msk.f32.mxu1 (!%p519_p9), %vm2579_vm0, %v2578_v0  ;;  %s2998_s0 = sld [smem:[#allocation11_spill]] (!%p519_p9)  ;;  %s2999_s2 = sld [smem:[#allocation13_spill]] (!%p519_p9) }
  0x1d   : > { %s3010_s25 = smov (!%p630_p10, %s2250_s25), 3 }
  0x1e   : > { %s2714_s26 = sshll.u32 %s3010_s25, 3 }
  0x1f   : > { %s639_s18 = scalar_lea.vmem %s2997_s1, %s2714_s26  ;;  %s633_s22 = scalar_lea.vmem %s2998_s0, %s2714_s26 }
  0x20   : > { %v711_v1 = vld [vmem:[%s639_s18] sm:$0xff]  ;;  %v712_v2 = vld [vmem:[%s639_s18 + $0x8] sm:$0xff]  ;;  %s657_s25 = scalar_lea.vmem %s2971_s4, %s2714_s26  ;;  %s651_s20 = scalar_lea.vmem %s2970_s3, %s2714_s26 }
  0x21   : > { %2341 = vmatpush3.xpose.msk.msra.mxu0 %vm713_vm1, %v711_v1  ;;  %v709_v3 = vld [vmem:[%s633_s22] sm:$0xff]  ;;  %2346 = vmatpush3.xpose.msk.msra.mxu1 %vm713_vm1, %v712_v2  ;;  %v710_v4 = vld [vmem:[%s633_s22 + $0x8] sm:$0xff]  ;;  %s675_s19 = scalar_lea.vmem %s2974_s7, %s2714_s26  ;;  %s2789_s18 = sand.u32 1, %s2568_s30  }
  0x22   : > { %2350 = vmatprep.subr.mxu0 %v2578_v0  ;;  %v893_v5 = vld [vmem:[%s657_s25] sm:$0x7f]  ;;  %2355 = vmatprep.subr.mxu1 %v2578_v0  ;;  %v894_v6 = vld [vmem:[%s657_s25 + $0x8] sm:$0x7f]  ;;  %s669_s25 = scalar_lea.vmem %s2973_s6, %s2714_s26  ;;  %s2985_s15 = sshll.u32 %s2789_s18, 4 }
  0x23   : > { %v891_v7 = vld [vmem:[%s651_s20] sm:$0x7f]  ;;  %v892_v9 = vld [vmem:[%s651_s20 + $0x8] sm:$0x7f]  ;;  %s645_s20 = scalar_lea.vmem %s2999_s2, %s2714_s26  ;;  %s681_s2 = scalar_lea.vmem %s2975_s8, %s2714_s26 }
  0x24   : > { %2343 = vmatmul.mubr.msk.f32.vlgmr.msra.gmra.mrb[0].mxu0 %vm713_vm1, %v709_v3  ;;  %2348 = vmatmul.mubr.msk.f32.vlgmr.msra.gmra.mrb[0].mxu1 %vm713_vm1, %v710_v4  ;;  %v1074_v8 = vld [vmem:[%s675_s19] sm:$0x7f]  ;;  %v1075_v10 = vld [vmem:[%s675_s19 + $0x8] sm:$0x7f]  ;;  %s2795_s19 = scalar_lea.vmem [#allocation4], %s2985_s15  ;;  %s663_s15 = scalar_lea.vmem %s2972_s5, %s2714_s26 }
  0x25   : > { %2351 = vmatpush3.xpose.msk.msra.mxu0 %vm713_vm1, %v893_v5  ;;  %2352 = vmatprep.mubr.msk.f32.mxu0 %vm2579_vm0, %v2578_v0  ;;  %v1072_v11 = vld [vmem:[%s669_s25] sm:$0x7f]  ;;  %v1073_v12 = vld [vmem:[%s669_s25 + $0x8] sm:$0x7f]  ;;  %s701_s25 = scalar_lea.vmem %s2980_s13, %s2714_s26  ;;  %s2986_s0 = sshll.u32 %s2680_s17, 8 }
  0x26   : > { %2360 = vmatprep.subr.mxu0 %v2578_v0  ;;  %2356 = vmatpush3.xpose.msk.msra.mxu1 %vm713_vm1, %v894_v6  ;;  %v1252_v4 = vld [vmem:[%s645_s20] sm:$0xff]  ;;  %v1253_v5 = vld [vmem:[%s645_s20 + $0x8] sm:$0xff]  ;;  %s707_s20 = scalar_lea.vmem %s2981_s14, %s2714_s26  ;;  %s1899_s27 = scalar_lea.sflag [#allocation5], %s2789_s18 }
  0x27   : > { %2357 = vmatprep.mubr.msk.f32.mxu1 %vm2579_vm0, %v2578_v0  ;;  %2365 = vmatprep.subr.mxu1 %v2578_v0 }
  0x28   : > { %2353 = vmatmul.mubr.msk.f32.vlgmr.msra.gmra.mrb[2].mxu0 %vm713_vm1, %v891_v7 }
  0x29   : > { %2361 = vmatpush3.xpose.msk.msra.mxu0 %vm713_vm1, %v1074_v8  ;;  %2362 = vmatprep.mubr.msk.f32.mxu0 %vm2579_vm0, %v2578_v0 }
  0x2a   : > { %2358 = vmatmul.mubr.msk.f32.vlgmr.msra.gmra.mrb[2].mxu1 %vm713_vm1, %v892_v9  ;;  %2370 = vmatprep.subr.mxu0 %v2578_v0 }
  0x2b   : > { %2366 = vmatpush3.xpose.msk.msra.mxu1 %vm713_vm1, %v1075_v10  ;;  %2367 = vmatprep.mubr.msk.f32.mxu1 %vm2579_vm0, %v2578_v0 }
  0x2c   : > { %2363 = vmatmul.mubr.msk.f32.vlgmr.msra.gmra.mrb[4].mxu0 %vm713_vm1, %v1072_v11  ;;  %2375 = vmatprep.subr.mxu1 %v2578_v0 }
  0x2d   : > { %2372 = vmatprep.mubr.msk.f32.mxu0 %vm2579_vm0, %v2578_v0  ;;  %2371 = vmatpush3.msra.mxu0 %v1252_v4 }
  0x2e   : > { %2368 = vmatmul.mubr.msk.f32.vlgmr.msra.gmra.mrb[4].mxu1 %vm713_vm1, %v1073_v12  ;;  %2380 = vmatprep.subr.mxu0 %v2578_v0 }
  0x2f   : > { %2377 = vmatprep.mubr.msk.f32.mxu1 %vm2579_vm0, %v2578_v0  ;;  %2376 = vmatpush3.msra.mxu1 %v1253_v5 }
  0x30   : > { %2385 = vmatprep.subr.mxu1 %v2578_v0 }
  0xf7   : > { %v786_v13 = vpop.f32.mrb[0].mxu0  ;;  %v862_v14 = vpop.f32.mrb[0].mxu1 }
  0xf8   : > { %v866_v15 = vmul.f32 0.25, %v786_v13  ;;  %v2344_v16 = vpop.f32.mrb[1].mxu0  ;;  %v867_v17 = vmul.f32 0.25, %v862_v14  ;;  %v2349_v18 = vpop.f32.mrb[1].mxu1 }
  0xfa   : > { %v869_v19 = vsel %vm868_vm2, %v866_v15, -inf  ;;  %v872_v23 = vsel %vm868_vm2, %v867_v17, -inf }
  0xfb   : > { %870 = vmax.xlane.f32.xlu0 %v869_v19  ;;  %v967_v20 = vpop.f32.mrb[2].mxu0 }
  0xfc   : > { %v1047_v21 = vmul.f32 0.25, %v967_v20  ;;  %v2354_v22 = vpop.f32.mrb[3].mxu0 }
  0xfd   : > { %v1043_v24 = vpop.f32.mrb[2].mxu1 }
  0xfe   : > { %v1048_v25 = vmul.f32 0.25, %v1043_v24  ;;  %v1050_v26 = vsel %vm1049_vm3, %v1047_v21, -inf  ;;  %v2359_v27 = vpop.f32.mrb[3].mxu1  ;;  %v1565_v24 = vld [vmem:[%s663_s15] sm:$0x7f] }
  0xff   : > { %873 = vmax.xlane.f32.xlu0 %v872_v23  ;;  %1051 = vmax.xlane.f32.xlu1 %v1050_v26  ;;  %v1148_v28 = vpop.f32.mrb[4].mxu0  ;;  %v1566_v27 = vld [vmem:[%s663_s15 + $0x8] sm:$0x7f]  ;;  %s2856_s15 = scalar_lea.hbm %s2979_s12, %s2986_s0 }
 0x100   : > { %v1228_v29 = vmul.f32 0.25, %v1148_v28  ;;  %v2364_v30 = vpop.f32.mrb[5].mxu0  ;;  %v1053_v31 = vsel %vm1049_vm3, %v1048_v25, -inf  ;;  %v1721_v28 = vld [vmem:[%s681_s2] sm:$0x7f] }
 0x101   : > { %v1224_v32 = vpop.f32.mrb[4].mxu1 }
 0x102   : > { %v1229_v33 = vmul.f32 0.25, %v1224_v32  ;;  %v1230_v34 = vsel %vm1049_vm3, %v1228_v29, -inf  ;;  %v2369_v35 = vpop.f32.mrb[5].mxu1 }
 0x103   : > { %1054 = vmax.xlane.f32.xlu0 %v1053_v31  ;;  %1231 = vmax.xlane.f32.xlu1 %v1230_v34 }
 0x104   : > { %v1233_v36 = vsel %vm1049_vm3, %v1229_v33, -inf }
 0x107   : > { %1234 = vmax.xlane.f32.xlu1 %v1233_v36 }
 0x188   : > { %v871_v37 = vpop.xlane.xlu0 %870 }
 0x189   : > { %v875_v38 = vsub.f32 %v866_v15, %v871_v37 }
 0x18b   : > { %v877_v39 = vmul.f32 1.442695, %v875_v38 }
 0x18c   : > { %v874_v40 = vpop.xlane.xlu0 %873  ;;  %v1052_v41 = vpop.xlane.xlu1 %1051 }
 0x18d   : > { %2458 = vpow2.f32 %v877_v39  ;;  %v876_v42 = vsub.f32 %v867_v17, %v874_v40  ;;  %v1056_v43 = vsub.f32 %v1047_v21, %v1052_v41 }
 0x18f   : > { %v879_v44 = vmul.f32 1.442695, %v876_v42  ;;  %v1058_v45 = vmul.f32 1.442695, %v1056_v43 }
 0x190   : > { %v1055_v46 = vpop.xlane.xlu0 %1054  ;;  %v1232_v47 = vpop.xlane.xlu1 %1231 }
 0x191   : > { %2460 = vpow2.f32 %v879_v44  ;;  %v1057_v48 = vsub.f32 %v1048_v25, %v1055_v46  ;;  %v1236_v49 = vsub.f32 %v1228_v29, %v1232_v47  ;;  %v1722_v29 = vld [vmem:[%s681_s2 + $0x8] sm:$0x7f] }
 0x192   : > { %2462 = vpow2.f32 %v1058_v45 }
 0x193   : > { %v1060_v50 = vmul.f32 1.442695, %v1057_v48  ;;  %v1238_v51 = vmul.f32 1.442695, %v1236_v49 }
 0x194   : > { %v1235_v52 = vpop.xlane.xlu1 %1234 }
 0x195   : > { %2464 = vpow2.f32 %v1060_v50  ;;  %v1237_v53 = vsub.f32 %v1229_v33, %v1235_v52 }
 0x196   : > { %2466 = vpow2.f32 %v1238_v51 }
 0x197   : > { %v2459_v54 = vpop.eup %2458  ;;  %v1240_v55 = vmul.f32 1.442695, %v1237_v53 }
 0x198   : > { %v881_v56 = vsel %vm868_vm2, %v2459_v54, 0.0 }
 0x199   : > { %2468 = vpow2.f32 %v1240_v55  ;;  %882 = vadd.xlane.f32.xlu0 %v881_v56 }
 0x19b   : > { %v2461_v57 = vpop.eup %2460 }
 0x19c   : > { %v2463_v58 = vpop.eup %2462  ;;  %v884_v59 = vsel %vm868_vm2, %v2461_v57, 0.0 }
 0x19d   : > { %v1062_v60 = vsel %vm1049_vm3, %v2463_v58, 0.0  ;;  %885 = vadd.xlane.f32.xlu1 %v884_v59 }
 0x19e   : > { %1063 = vadd.xlane.f32.xlu0 %v1062_v60 }
 0x19f   : > { %v2465_v61 = vpop.eup %2464 }
 0x1a0   : > { %v2467_v62 = vpop.eup %2466  ;;  %v1065_v63 = vsel %vm1049_vm3, %v2465_v61, 0.0 }
 0x1a1   : > { %v1242_v1 = vsel %vm1049_vm3, %v2467_v62, 0.0 }
 0x1a2   : > { %1066 = vadd.xlane.f32.xlu0 %v1065_v63  ;;  %1243 = vadd.xlane.f32.xlu1 %v1242_v1 }
 0x1a3   : > { %v2469_v2 = vpop.eup %2468 }
 0x1a4   : > { %v1245_v3 = vsel %vm1049_vm3, %v2469_v2, 0.0 }
 0x1a6   : > { %1246 = vadd.xlane.f32.xlu1 %v1245_v3 }
 0x226   : > { %v883_v6 = vpop.xlane.xlu0 %882 }
 0x227   : > { %2470 = vrcp.f32 %v883_v6 }
 0x22a   : > { %v886_v7 = vpop.xlane.xlu1 %885 }
 0x22b   : > { %v1064_v8 = vpop.xlane.xlu0 %1063  ;;  %2472 = vrcp.f32 %v886_v7 }
 0x22c   : > { %2474 = vrcp.f32 %v1064_v8 }
 0x22f   : > { %v1067_v9 = vpop.xlane.xlu0 %1066  ;;  %v1244_v10 = vpop.xlane.xlu1 %1243 }
 0x230   : > { %2476 = vrcp.f32 %v1067_v9 }
 0x231   : > { %v2471_v11 = vpop.eup %2470  ;;  %2478 = vrcp.f32 %v1244_v10 }
 0x232   : > { %v889_v12 = vmul.f32 %v2471_v11, %v2459_v54 }
 0x233   : > { %v1247_v13 = vpop.xlane.xlu1 %1246 }
 0x234   : > { %2480 = vrcp.f32 %v1247_v13  ;;  %2373 = vmatmul.mubr.msk.f32.vlgmr.msra.gmra.mrb[6].mxu0 %vm868_vm2, %v889_v12  ;;  %1877 = vst.msk [vmem:[%s2795_s19] sm:$0xff] %vm868_vm2, %v889_v12 }
 0x235   : > { %v2473_v14 = vpop.eup %2472  ;;  %2381 = vmatpush3.msk.msra.mxu0 %vm1408_vm4, %v1252_v4  ;;  %2382 = vmatprep.mubr.msk.f32.mxu0 %vm2579_vm0, %v2578_v0 }
 0x236   : > { %v2475_v15 = vpop.eup %2474  ;;  %v890_v16 = vmul.f32 %v2473_v14, %v2461_v57  ;;  %2390 = vmatprep.subr.mxu0 %v2578_v0 }
 0x237   : > { %v1070_v17 = vmul.f32 %v2475_v15, %v2463_v58 }
 0x238   : > { %2378 = vmatmul.mubr.msk.f32.vlgmr.msra.gmra.mrb[6].mxu1 %vm868_vm2, %v890_v16  ;;  %1878 = vst.msk [vmem:[%s2795_s19 + $0x8] sm:$0xff] %vm868_vm2, %v890_v16 }
 0x239   : > { %1879 = vst.msk [vmem:[%s701_s25] sm:$0x7f] %vm1049_vm3, %v1070_v17  ;;  %2386 = vmatpush3.msk.msra.mxu1 %vm1408_vm4, %v1253_v5  ;;  %2387 = vmatprep.mubr.msk.f32.mxu1 %vm2579_vm0, %v2578_v0 }
 0x23a   : > { %v2477_v18 = vpop.eup %2476  ;;  %2395 = vmatprep.subr.mxu1 %v2578_v0 }
 0x23b   : > { %v2479_v19 = vpop.eup %2478  ;;  %v1071_v20 = vmul.f32 %v2477_v18, %v2465_v61 }
 0x23c   : > { %v1250_v21 = vmul.f32 %v2479_v19, %v2467_v62 }
 0x23d   : > { %1880 = vst.msk [vmem:[%s701_s25 + $0x8] sm:$0x7f] %vm1049_vm3, %v1071_v20  ;;  %s1946_s25 = sshll.u32 %s2795_s19, 4  ;;  %s2859_s25 = int_to_ptr.vmem [resolvable:$true] %s1946_s25 }
 0x23e   : > { %v2481_v22 = vpop.eup %2480  ;;  %1881 = vst.msk [vmem:[%s707_s20] sm:$0x7f] %vm1049_vm3, %v1250_v21  ;;  %v1402_v23 = vadd.f32 %v1250_v21, %v1070_v17  ;;  %s2482_s28 = scalar_lea.vmem %s2859_s25, 256 }
 0x23f   : > { %v1251_v25 = vmul.f32 %v2481_v22, %v2469_v2  ;;  %p2483_p11 = scmp.ne.s32.totalorder %s2859_s25, %s2482_s28 }
 0x240   : > { %2383 = vmatmul.mubr.msk.f32.vlgmr.msra.gmra.mrb[8].mxu0 %vm1404_vm5, %v1402_v23 }
 0x241   : > { %1882 = vst.msk [vmem:[%s707_s20 + $0x8] sm:$0x7f] %vm1049_vm3, %v1251_v25  ;;  %2391 = vmatpush3.msk.msra.mxu0 %vm1408_vm4, %v1565_v24  ;;  %2392 = vmatprep.mubr.msk.f32.mxu0 %vm2579_vm0, %v2578_v0  ;;  %v1403_v26 = vadd.f32 %v1251_v25, %v1071_v20  ;;  %p2484_p12 = pnand %p2483_p11, %p2697_p5  ;;  %s2580_s20 = smov [#allocation4]  }
 0x242   : > { %2400 = vmatprep.subr.mxu0 %v2578_v0  ;;  %s2486_s22 = sshll.u32 %s2580_s20, 4  ;;  %s2487_s22 = int_to_ptr.vmem [resolvable:$false] %s2486_s22 }
 0x243   : > { %2388 = vmatmul.mubr.msk.f32.vlgmr.msra.gmra.mrb[8].mxu1 %vm1404_vm5, %v1403_v26  ;;  %p2485_p13 = pneg %p2484_p12  ;;  %s2488_s21 = scalar_lea.vmem %s2487_s22, 512 }
 0x244   : > { %2393 = vmatmul.mubr.msk.f32.vlgmr.msra.gmra.mrb[10].mxu0 %vm1404_vm5, %v1070_v17  ;;  %2396 = vmatpush3.msk.msra.mxu1 %vm1408_vm4, %v1566_v27  ;;  %p2489_p0 = scmp.lt.s32.totalorder %s2859_s25, %s2487_s22  ;;  %p2490_p1 = scmp.lt.s32.totalorder %s2488_s21, %s2482_s28 }
 0x245   : > { %2397 = vmatprep.mubr.msk.f32.mxu1 %vm2579_vm0, %v2578_v0  ;;  %2401 = vmatpush3.msk.msra.mxu0 %vm1408_vm4, %v1721_v28 }
 0x246   : > { %2402 = vmatprep.mubr.msk.f32.mxu0 %vm2579_vm0, %v2578_v0  ;;  %2405 = vmatprep.subr.mxu1 %v2578_v0  ;;  %p2491_p2 = por %p2490_p1, %p2489_p0 }
 0x247   : > { %2398 = vmatmul.mubr.msk.f32.vlgmr.msra.gmra.mrb[10].mxu1 %vm1404_vm5, %v1071_v20 }
 0x248   : > { %2403 = vmatmul.mubr.msk.f32.vlgmr.msra.gmra.mrb[12].mxu0 %vm1404_vm5, %v1250_v21  ;;  %2406 = vmatpush3.msk.msra.mxu1 %vm1408_vm4, %v1722_v29  ;;  %p2492_p3 = pnand %p2491_p2, %p2485_p13 }
 0x249   : > { %2407 = vmatprep.mubr.msk.f32.mxu1 %vm2579_vm0, %v2578_v0 }
 0x24b   : > { %2408 = vmatmul.mubr.msk.f32.vlgmr.msra.gmra.mrb[12].mxu1 %vm1404_vm5, %v1251_v25 }
 0x24c   : > { %2495 = shalt.err (!%p2492_p3)
}
 0x24d   : > { %s2496_s19 = scalar_lea.hbm %s2856_s15, 256  ;;  %s2500_s20 = scalar_lea.hbm %s2979_s12, 512 }
 0x24e   : > { %p2497_p4 = scmp.ne.s32.totalorder %s2856_s15, %s2496_s19  ;;  %p2501_p9 = scmp.lt.u32.totalorder %s2856_s15, %s2979_s12 }
 0x24f   : > { %p2502_p10 = scmp.lt.u32.totalorder %s2500_s20, %s2496_s19  ;;  %p2504_p12 = scmp.lt.u32.totalorder %s2496_s19, %s2856_s15 }
 0x250   : > { %p2498_p7 = pnand %p2497_p4, %p2697_p5 }
 0x251   : > { %p2503_p11 = por %p2502_p10, %p2501_p9 }
 0x252   : > { %p2499_p8 = pneg %p2498_p7 }
 0x253   : > { %p2505_p13 = por %p2504_p12, %p2503_p11 }
 0x255   : > { %p2506_p0 = pnand %p2505_p13, %p2499_p8 }
 0x257   : > { %2509 = shalt.err (!%p2506_p0)
}
 0x258   : > { %s2987_s28 = smov 128   ;;  %s2988_s21 = smov 8   ;;  %vm1562_vm6 = vcmask 129024  }
 0x259   : > { %2411 = dma.vmem_to_hbm [thread:$0]  (%p2697_p5), %s2859_s25, 256, %s2856_s15, %s1899_s27, %s2987_s28, %s2987_s28, %s2988_s21  }
 0x25a   : > { %s3000_s0 = sshll.u32 %s2789_s18, 4  ;;  %s2896_s27 = scalar_lea.vmem %s2977_s10, %s2714_s26 }
 0x25b   : > { %s593_s19 = scalar_lea.vmem [#allocation2], %s3000_s0  ;;  %s3001_s2 = sshll.u32 %s2680_s17, 8 }
 0x25c   : > { %s1922_s1 = sshll.u32 %s593_s19, 4  ;;  %s2904_s0 = scalar_lea.hbm %s2976_s9, %s3001_s2  ;;  %s2906_s1 = int_to_ptr.vmem [resolvable:$true] %s1922_s1 }
 0x25d   : > { %s2915_s28 = scalar_lea.vmem %s2978_s11, %s2714_s26  ;;  %s1884_s17 = scalar_lea.sflag [#allocation3], %s2789_s18 }
 0x25e   : > { %s2510_s20 = scalar_lea.vmem %s2906_s1, 256  ;;  %s2583_s2 = smov [#allocation2]  }
 0x25f   : > { %p2511_p1 = scmp.ne.s32.totalorder %s2906_s1, %s2510_s20  ;;  %s2514_s22 = sshll.u32 %s2583_s2, 4  ;;  %s2515_s22 = int_to_ptr.vmem [resolvable:$false] %s2514_s22 }
 0x260   : > { %s2516_s21 = scalar_lea.vmem %s2515_s22, 512  ;;  %p2517_p4 = scmp.lt.s32.totalorder %s2906_s1, %s2515_s22 }
 0x261   : > { %p2512_p2 = pnand %p2511_p1, %p2697_p5  ;;  %p2518_p7 = scmp.lt.s32.totalorder %s2516_s21, %s2510_s20 }
 0x263   : > { %p2513_p3 = pneg %p2512_p2  ;;  %p2519_p8 = por %p2518_p7, %p2517_p4 }
 0x265   : > { %p2520_p9 = pnand %p2519_p8, %p2513_p3 }
 0x307   : > { %v1323_v0 = vpop.f32.mrb[6].mxu0 }
 0x308   : > { %1400 = vst.msk [vmem:[%s593_s19] sm:$0xff] %vm713_vm1, %v1323_v0  ;;  %v2374_v30 = vpop.f32.mrb[7].mxu0 }
 0x30b   : > { %v1396_v31 = vpop.f32.mrb[6].mxu1 }
 0x30c   : > { %1401 = vst.msk [vmem:[%s593_s19 + $0x8] sm:$0xff] %vm713_vm1, %v1396_v31  ;;  %v2379_v32 = vpop.f32.mrb[7].mxu1 }
 0x30f   : > { %v1558_v34 = vld [vmem:[%s593_s19 + $0x1] sm:$0x7f] }
 0x313   : > { %v1478_v33 = vpop.f32.mrb[8].mxu0  ;;  %v1559_v38 = vld [vmem:[%s593_s19 + $0x9] sm:$0x7f] }
 0x314   : > { %v1560_v35 = vadd.f32 %v1558_v34, %v1478_v33  ;;  %v2384_v36 = vpop.f32.mrb[9].mxu0 }
 0x316   : > { %1563 = vst.msk [vmem:[%s593_s19 + $0x1] sm:$0x7f] %vm1562_vm6, %v1560_v35  ;;  %v1554_v37 = vpop.f32.mrb[8].mxu1 }
 0x317   : > { %v1561_v39 = vadd.f32 %v1559_v38, %v1554_v37  ;;  %v1639_v40 = vpop.f32.mrb[10].mxu0  ;;  %v2389_v41 = vpop.f32.mrb[9].mxu1 }
 0x318   : > { %1719 = vst.msk [vmem:[%s2896_s27] sm:$0x7f] %vm1562_vm6, %v1639_v40  ;;  %v2394_v42 = vpop.f32.mrb[11].mxu0 }
 0x319   : > { %1564 = vst.msk [vmem:[%s593_s19 + $0x9] sm:$0x7f] %vm1562_vm6, %v1561_v39 }
 0x31a   : > { %v1715_v43 = vpop.f32.mrb[10].mxu1 }
 0x31b   : > { %2523 = shalt.err (!%p2520_p9)
}
 0x31c   : > { %s2524_s26 = scalar_lea.hbm %s2904_s0, 256  ;;  %s2528_s25 = scalar_lea.hbm %s2976_s9, 512 }
 0x31d   : > { %p2525_p10 = scmp.ne.s32.totalorder %s2904_s0, %s2524_s26  ;;  %p2529_p13 = scmp.lt.u32.totalorder %s2904_s0, %s2976_s9 }
 0x31e   : > { %p2530_p0 = scmp.lt.u32.totalorder %s2528_s25, %s2524_s26  ;;  %p2532_p2 = scmp.lt.u32.totalorder %s2524_s26, %s2904_s0 }
 0x31f   : > { %p2526_p11 = pnand %p2525_p10, %p2697_p5 }
 0x320   : > { %p2531_p1 = por %p2530_p0, %p2529_p13 }
 0x321   : > { %p2527_p12 = pneg %p2526_p11 }
 0x322   : > { %p2533_p3 = por %p2532_p2, %p2531_p1 }
 0x324   : > { %p2534_p4 = pnand %p2533_p3, %p2527_p12 }
 0x326   : > { %2537 = shalt.err (!%p2534_p4)
}
 0x327   : > { %s3002_s21 = smov 8   ;;  %s3003_s20 = smov 128   ;;  %1720 = vst.msk [vmem:[%s2896_s27 + $0x8] sm:$0x7f] %vm1562_vm6, %v1715_v43  ;;  %v1795_v44 = vpop.f32.mrb[12].mxu0  ;;  %v2399_v45 = vpop.f32.mrb[11].mxu1 }
 0x328   : > { %2410 = dma.vmem_to_hbm [thread:$0]  (%p2697_p5), %s2906_s1, 256, %s2904_s0, %s1884_s17, %s3003_s20, %s3003_s20, %s3002_s21   ;;  %v2404_v46 = vpop.f32.mrb[13].mxu0  ;;  %v1871_v47 = vpop.f32.mrb[12].mxu1 }
 0x329   : > { %1875 = vst.msk [vmem:[%s2915_s28] sm:$0x7f] %vm1562_vm6, %v1795_v44  ;;  %1876 = vst.msk [vmem:[%s2915_s28 + $0x8] sm:$0x7f] %vm1562_vm6, %v1871_v47  ;;  %v2409_v48 = vpop.f32.mrb[13].mxu1 }
 0x32a PF: > { %p2421_p7 = scmp.ge.s32.totalorder %s2576_s16, 2  ;;  %s1969_s23 = sand.u32 1, %s2564_s29  }
 0x32b   : > { %s1970_s18 = scalar_lea.sflag [#allocation3], %s1969_s23 }
 0x32c   : > { %p2415_p8 = pnand %p2421_p7, %p2701_p6 }
 0x32e   : > { %2555 = dma.done.wait (!%p2415_p8), %s1970_s18, 256  }
 0x32f   : > { %2557 = vsyncadd (!%p2415_p8), %s1970_s18, 4294967040  ;;  %s1995_s1 = scalar_lea.sflag [#allocation5], %s1969_s23 }
 0x330   : > { %2559 = dma.done.wait (!%p2415_p8), %s1995_s1, 256  }
 0x331   : > { %2561 = vsyncadd (!%p2415_p8), %s1995_s1, 4294967040  ;;  %s3004_s16 = sld [smem:[#allocation9_spill]]  ;;  %s3005_s27 = sld [smem:[#allocation8_spill]] }
 0x332   : > { %s3006_s15 = sld [smem:[#allocation10_spill]]  ;;  %s3007_s29 = smov %s2568_s30 }
 0x337   : > { %p28_p5 = scmp.ge.s32.totalorder %s3004_s16, 4   ;;  %s3008_s30 = smov %s3005_s27 }
 0x339   :  { %30 = sbr.rel (!%p28_p5) target bundleno = 9 (0x9), region = 180 }
 0x340   :  { %2016 = vsyncpa [#allocation3], 1 }
 0x341   :  { %2018 = vsyncpa [#allocation3 + $0x1], 1 }
 0x342   :  { %2019 = vsyncpa [#allocation5], 1 }
 0x343   :  { %2021 = vsyncpa [#allocation5 + $0x1], 1 }

</bundles_post_ra>
